<compile_context>
chip_gen: v5e
topology: v5e:2x2
jax: 0.10.0
libtpu: 0.0.40
codegen_flags: <defaults>
</compile_context>

<pallas_src>
import functools

import jax
import jax.numpy as jnp
from jax import lax
from jax.experimental import pallas as pl
from jax.experimental.pallas import tpu as pltpu


def _round_up(a, b):
    return ((a + b - 1) // b) * b


# ----------------------------------------------------------------------------
# Pallas kernel: fused  out = relu( (patches @ W) * scale + shift )
# ----------------------------------------------------------------------------
def _conv_bn_relu_kernel(p_ref, w_ref, scale_ref, shift_ref, o_ref):
    # (tm, K) @ (K, tn) on the MXU, f32 accumulation.
    acc = jnp.dot(p_ref[...], w_ref[...], preferred_element_type=jnp.float32)
    y = acc * scale_ref[...] + shift_ref[...]          # broadcast (1, tn)
    o_ref[...] = jnp.maximum(y, 0.0).astype(o_ref.dtype)


# ----------------------------------------------------------------------------
# im2col (plain-JAX glue)
# ----------------------------------------------------------------------------
def _im2col(x, kh, kw, stride, padding):
    """x: [N, C, H, W] -> patches [N*Ho*Wo, C*kh*kw] (C-major, then kh, kw)."""
    n, c, h, w = x.shape
    sh, sw = stride
    ph, pw = padding
    xp = jnp.pad(x, ((0, 0), (0, 0), (ph, ph), (pw, pw)))
    ho = (h + 2 * ph - kh) // sh + 1
    wo = (w + 2 * pw - kw) // sw + 1
    cols = []
    for i in range(kh):
        for j in range(kw):
            cols.append(xp[:, :, i:i + sh * ho:sh, j:j + sw * wo:sw])
    # [N, C, KH*KW, Ho, Wo]  (matches PyTorch weight flatten order C_in, KH, KW)
    patches = jnp.stack(cols, axis=2)
    patches = patches.reshape(n, c * kh * kw, ho * wo)
    patches = patches.transpose(0, 2, 1).reshape(n * ho * wo, c * kh * kw)
    return patches, ho, wo


# ----------------------------------------------------------------------------
# Tile selection from a VMEM budget
# ----------------------------------------------------------------------------
def _choose_tiles(m, k, c_pad, in_bytes, out_bytes):
    # N tile: MXU-native width (256 on v6e/v7x when it divides, else 128).
    tn = 256 if (c_pad % 256 == 0) else 128
    # Double-buffered pipeline budget; leaves headroom under the 32 MiB scoped
    # default and well under v7x's 64 MiB physical VMEM.
    budget = 24 * 1024 * 1024
    fixed = 2 * k * tn * in_bytes + 4 * tn * 4          # weight + scale/shift (x2 buf)
    per_row = 2 * (k * in_bytes + tn * out_bytes)        # patches + output rows (x2 buf)
    tm = max(8, (budget - fixed) // per_row)
    tm = min(tm, 1024)
    # Keep >= 2 grid steps along M when M allows, so v7x's two TensorCores
    # both get work (harmless on single-TC v5e/v6e).
    half = _round_up(max(1, -(-m // 2)), 8)
    tm = min(tm, half)
    if tm >= 128:
        tm = (tm // 128) * 128
    else:
        tm = max(8, (tm // 8) * 8)
    # TODO(synk): for very large K (big C_in with 3x3+) a K grid axis with an
    # f32 VMEM accumulator would be preferable to shrinking tm.
    return int(tm), int(tn)


# ----------------------------------------------------------------------------
# Wrapper
# ----------------------------------------------------------------------------
@functools.partial(jax.jit, static_argnames=("stride", "padding"))
def basic_conv2d(x, weight, gamma, beta, running_mean, running_var,
                 *, stride=(1, 1), padding=(0, 0), eps=1e-3):
    """BasicConv2d forward: relu(batchnorm(conv2d(x, weight))).

    x:      [N, C_in, H, W]        (NCHW, like PyTorch)
    weight: [C_out, C_in, KH, KW]  (PyTorch Conv2d layout, bias=False)
    BN params: [C_out] each (affine=True, track_running_stats=True, eval mode).
    """
    n, c_in, h, w = x.shape
    c_out, _, kh, kw = weight.shape

    compute_dtype = jnp.bfloat16      # MXU-friendly, halves HBM/VMEM traffic
    out_dtype = jnp.float32

    # TODO(synk): im2col still materializes a KH*KW-inflated patches array in
    # HBM; fusing the patch gather into the kernel (manual DMA over an input
    # row window) would cut HBM read traffic by up to KH*KW.
    x_c = x.astype(compute_dtype)
    patches, ho, wo = _im2col(x_c, kh, kw, stride, padding)     # [M, K] bf16
    m, k = patches.shape
    w_mat = weight.astype(compute_dtype).reshape(c_out, c_in * kh * kw).T  # [K, C_out]

    # Fold eval-mode BatchNorm into per-channel scale / shift (kept in f32).
    inv_std = 1.0 / jnp.sqrt(running_var.astype(jnp.float32) + eps)
    scale = gamma.astype(jnp.float32) * inv_std
    shift = beta.astype(jnp.float32) - running_mean.astype(jnp.float32) * scale

    # Lane-dense output: pad C_out to a multiple of 128; pad M to the row tile.
    c_pad = _round_up(c_out, 128)
    in_b = jnp.dtype(compute_dtype).itemsize
    out_b = jnp.dtype(out_dtype).itemsize
    tm, tn = _choose_tiles(m, k, c_pad, in_b, out_b)
    m_pad = _round_up(m, tm)

    patches_p = jnp.pad(patches, ((0, m_pad - m), (0, 0)))
    w_mat_p = jnp.pad(w_mat, ((0, 0), (0, c_pad - c_out)))
    scale_p = jnp.pad(scale, (0, c_pad - c_out)).reshape(1, c_pad)
    shift_p = jnp.pad(shift, (0, c_pad - c_out)).reshape(1, c_pad)

    grid = (m_pad // tm, c_pad // tn)

    # Double-buffered VMEM estimate + headroom (each input and the output get
    # two buffers); cap well below v7x's 64 MiB physical VMEM.
    est = 2 * (tm * k * in_b + k * tn * in_b + 2 * tn * 4 + tm * tn * out_b)
    vmem_limit = int(min(48 * 1024 * 1024, max(32 * 1024 * 1024, 2 * est)))

    out_flat = pl.pallas_call(
        _conv_bn_relu_kernel,
        out_shape=jax.ShapeDtypeStruct((m_pad, c_pad), out_dtype),
        grid_spec=pltpu.PrefetchScalarGridSpec(
            num_scalar_prefetch=0,
            grid=grid,
            in_specs=[
                pl.BlockSpec((tm, k), lambda i, j: (i, 0)),     # patches tile
                pl.BlockSpec((k, tn), lambda i, j: (0, j)),     # weight tile
                pl.BlockSpec((1, tn), lambda i, j: (0, j)),     # bn scale
                pl.BlockSpec((1, tn), lambda i, j: (0, j)),     # bn shift
            ],
            out_specs=pl.BlockSpec((tm, tn), lambda i, j: (i, j)),
        ),
        compiler_params=pltpu.CompilerParams(
            dimension_semantics=("parallel", "parallel"),
            vmem_limit_bytes=vmem_limit),
    )(patches_p, w_mat_p, scale_p, shift_p)

    # [M_pad, C_pad] -> valid rows/cols -> [N, Ho, Wo, C_out] -> NCHW.
    # NOTE: if the surrounding network runs NHWC, drop this final transpose.
    out = out_flat[:m, :c_out].reshape(n, ho, wo, c_out).transpose(0, 3, 1, 2)
    return out


# ----------------------------------------------------------------------------
# Pure-JAX reference (sanity check)
# ----------------------------------------------------------------------------
def basic_conv2d_ref(x, weight, gamma, beta, running_mean, running_var,
                     *, stride=(1, 1), padding=(0, 0), eps=1e-3):
    y = lax.conv_general_dilated(
        x, weight, window_strides=stride,
        padding=[(padding[0], padding[0]), (padding[1], padding[1])],
        dimension_numbers=("NCHW", "OIHW", "NCHW"),
        preferred_element_type=jnp.float32)
    scale = (gamma / jnp.sqrt(running_var + eps)).reshape(1, -1, 1, 1)
    shift = (beta - running_mean * gamma /
             jnp.sqrt(running_var + eps)).reshape(1, -1, 1, 1)
    return jnp.maximum(y * scale + shift, 0.0)


if __name__ == "__main__":
    # Small, deterministic configuration: BasicConv2d(4, 8, kernel_size=(3,3),
    # stride=(1,1), padding=(1,1), bias=False)
    N, C_IN, H, W = 2, 4, 16, 16
    C_OUT, KH, KW = 8, 3, 3
    STRIDE, PADDING = (1, 1), (1, 1)

    key = jax.random.PRNGKey(0)
    kx, kw_, kg, kb, km, kv = jax.random.split(key, 6)

    x = jax.random.normal(kx, (N, C_IN, H, W), dtype=jnp.float32)
    weight = jax.random.normal(kw_, (C_OUT, C_IN, KH, KW), dtype=jnp.float32) * 0.1
    gamma = 1.0 + 0.1 * jax.random.normal(kg, (C_OUT,), dtype=jnp.float32)
    beta = 0.1 * jax.random.normal(kb, (C_OUT,), dtype=jnp.float32)
    running_mean = 0.1 * jax.random.normal(km, (C_OUT,), dtype=jnp.float32)
    running_var = jax.random.uniform(kv, (C_OUT,), dtype=jnp.float32,
                                     minval=0.5, maxval=1.5)

    out = basic_conv2d(x, weight, gamma, beta, running_mean, running_var,
                       stride=STRIDE, padding=PADDING)
    out = jax.block_until_ready(out)

    # Reference with the same bf16 quantization of x/weight (the kernel casts
    # them to bf16), so only accumulation-order differences remain.
    x_q = x.astype(jnp.bfloat16).astype(jnp.float32)
    w_q = weight.astype(jnp.bfloat16).astype(jnp.float32)
    ref = basic_conv2d_ref(x_q, w_q, gamma, beta, running_mean, running_var,
                           stride=STRIDE, padding=PADDING)

    assert out.shape == (N, C_OUT, H, W), out.shape
    assert jnp.allclose(out, ref, atol=5e-3, rtol=5e-3), \
        float(jnp.max(jnp.abs(out - ref)))

    print("KERNEL_OK")
</pallas_src>

<mosaic_0001>
module attributes {stable_mosaic.version = 11 : i64} {
  func.func @_conv_bn_relu_kernel(%arg0: i32, %arg1: i32, %arg2: memref<256x36xbf16, #tpu.memory_space<vmem>>, %arg3: memref<36x128xbf16, #tpu.memory_space<vmem>>, %arg4: memref<1x128xf32, #tpu.memory_space<vmem>>, %arg5: memref<1x128xf32, #tpu.memory_space<vmem>>, %arg6: memref<256x128xf32, #tpu.memory_space<vmem>>) attributes {dimension_semantics = [#tpu.dimension_semantics<parallel>, #tpu.dimension_semantics<parallel>], iteration_bounds = array<i64: 2, 1>, scalar_prefetch = 0 : i64, scratch_operands = 0 : i64, tpu.core_type = #tpu.core_type<tc>, window_params = [{transform_indices = @transform_0, window_bounds = array<i64: 256, 36>}, {transform_indices = @transform_1, window_bounds = array<i64: 36, 128>}, {transform_indices = @transform_2, window_bounds = array<i64: 1, 128>}, {transform_indices = @transform_3, window_bounds = array<i64: 1, 128>}, {transform_indices = @transform_4, window_bounds = array<i64: 256, 128>}]} {
    %c0 = arith.constant 0 : index
    %c0_0 = arith.constant 0 : index
    %0 = vector.load %arg2[%c0, %c0_0] : memref<256x36xbf16, #tpu.memory_space<vmem>>, vector<256x36xbf16>
    %c0_1 = arith.constant 0 : index
    %c0_2 = arith.constant 0 : index
    %1 = vector.load %arg3[%c0_1, %c0_2] : memref<36x128xbf16, #tpu.memory_space<vmem>>, vector<36x128xbf16>
    %cst = arith.constant dense<0.000000e+00> : vector<256x128xf32>
    %2 = tpu.matmul %0, %1, %cst {dimension_numbers = #tpu.dot_dimension_numbers<[1], [0], [0], [1], [0, 0, 1, 1], [], []>} : vector<256x36xbf16>, vector<36x128xbf16>, vector<256x128xf32> -> vector<256x128xf32>
    %c0_3 = arith.constant 0 : index
    %c0_4 = arith.constant 0 : index
    %3 = vector.load %arg4[%c0_3, %c0_4] : memref<1x128xf32, #tpu.memory_space<vmem>>, vector<1x128xf32>
    %4 = vector.broadcast %3 : vector<1x128xf32> to vector<256x128xf32>
    %5 = arith.mulf %2, %4 : vector<256x128xf32>
    %c0_5 = arith.constant 0 : index
    %c0_6 = arith.constant 0 : index
    %6 = vector.load %arg5[%c0_5, %c0_6] : memref<1x128xf32, #tpu.memory_space<vmem>>, vector<1x128xf32>
    %7 = vector.broadcast %6 : vector<1x128xf32> to vector<256x128xf32>
    %8 = arith.addf %5, %7 : vector<256x128xf32>
    %cst_7 = arith.constant 0.000000e+00 : f32
    %9 = vector.broadcast %cst_7 : f32 to vector<256x128xf32>
    %10 = arith.maximumf %8, %9 : vector<256x128xf32>
    %c0_8 = arith.constant 0 : index
    %c0_9 = arith.constant 0 : index
    %11 = vector.load %arg6[%c0_8, %c0_9] : memref<256x128xf32, #tpu.memory_space<vmem>>, vector<256x128xf32>
    tpu.vector_store %arg6[%c0_8, %c0_9], %10 {strides = array<i32>} : memref<256x128xf32, #tpu.memory_space<vmem>>, vector<256x128xf32>,
    return
  }
  func.func @transform_0(%arg0: i32, %arg1: i32) -> (i32, i32) {
    %c0_i32 = arith.constant 0 : i32
    %c0_i32_0 = arith.constant 0 : i32
    return %arg0, %c0_i32 : i32, i32
  }
  func.func @transform_1(%arg0: i32, %arg1: i32) -> (i32, i32) {
    %c0_i32 = arith.constant 0 : i32
    %c0_i32_0 = arith.constant 0 : i32
    return %c0_i32, %arg1 : i32, i32
  }
  func.func @transform_2(%arg0: i32, %arg1: i32) -> (i32, i32) {
    %c0_i32 = arith.constant 0 : i32
    %c0_i32_0 = arith.constant 0 : i32
    return %c0_i32, %arg1 : i32, i32
  }
  func.func @transform_3(%arg0: i32, %arg1: i32) -> (i32, i32) {
    %c0_i32 = arith.constant 0 : i32
    %c0_i32_0 = arith.constant 0 : i32
    return %c0_i32, %arg1 : i32, i32
  }
  func.func @transform_4(%arg0: i32, %arg1: i32) -> (i32, i32) {
    %c0_i32 = arith.constant 0 : i32
    return %arg0, %arg1 : i32, i32
  }
}

</mosaic_0001>

<bundles_post_ra>
// kernel: basic_conv2d.1
= control target key start
LH: loop header
LB: loop body
LE: loop exit
PB: predicated region body
PF: predicated region fallthrough
CT: control target
= control target key end

     0   :  { %s995_s15 = smov 0   ;;  %s997_s16 = smov 0   ;;  %s1183_s0 = inlined_call_operand.vmem [shape: bf16[512,36], index: 0, kind: input, shape index: {}]   ;;  %s1184_s1 = inlined_call_operand.vmem [shape: bf16[36,128], index: 1, kind: input, shape index: {}]   ;;  %s1185_s2 = inlined_call_operand.vmem [shape: f32[1,128], index: 2, kind: input, shape index: {}]   ;;  %s1186_s3 = inlined_call_operand.vmem [shape: f32[1,128], index: 3, kind: input, shape index: {}]   ;;  %s1187_s4 = inlined_call_operand.vmem [shape: f32[512,128], index: 4, kind: output, shape index: {}]  }
   0x1   :  { %s999_s17 = smov 0  }
   0x2 LB: > { %s26_s18 = sadd.s32 1, %s964_s16  ;;  %p798_p0 = scmp.ge.s32.totalorder %s968_s17, 1  ;;  %s968_s17 = sphi %s999_s17, %s14_s17   ;;  %s964_s16 = sphi %s997_s16, %s1189_s16   ;;  %s960_s15 = sphi %s995_s15, %s1188_s15  }
   0x3   : > { %p28_p1 = scmp.ge.s32.totalorder %s26_s18, 2  ;;  %p202_p2 = scmp.lt.s32.totalorder %s968_s17, 3 }
   0x5   : > { %s1191_s18 = smov (%p28_p1, %s26_s18), 0  ;;  %p203_p3 = pnand %p798_p0, %p202_p2 }
   0x6   : > { %s799_s21 = sshll.u32 (!%p203_p3), %s960_s15, 5 }
   0x7   : > { %206 = sbr.rel (%p203_p3) target bundleno = 226 (0xe2), region = 36  ;;  %p242_p4 = scmp.lt.s32.totalorder (!%p203_p3), %s799_s21, 63 }
   0xc   : > { %v303_v0 = vld [vmem:[%s1184_s1 + $0x10] sm:$0x3]  ;;  %vm448_vm0 = vcmask 1041408   ;;  %s1193_s21 = smov (!%p242_p4, %s799_s21), 63  ;;  %v910_v4 = vld [vmem:[%s1184_s1 + $0x8] sm:$0xff]  ;;  %v909_v5 = vld [vmem:[%s1184_s1] sm:$0xff] }
   0xd   : > { %v393_v1 = vunpack.c.l.b16 %v303_v0  ;;  %s800_s24 = sshll.u32 %s1193_s21, 2  ;;  %vm399_vm1 = vcmask 293888   ;;  %v1065_v22 = vld [vmem:[%s1185_s2] ss:$0 sm:$0xff]  ;;  %s802_s8 = sshll.u32 %s1193_s21, 3 }
   0xe   : > { %s1028_s29 = scalar_lea.vmem %s1183_s0, %s800_s24  ;;  %v1070_v23 = vld [vmem:[%s1186_s3] ss:$0 sm:$0xff]  ;;  %s1080_s11 = scalar_lea.vmem %s1187_s4, %s802_s8 }
   0xf   : > { %v396_v2 = vpack.c.b16 %v393_v1, %v393_v1  ;;  %v893_v6 = vld [vmem:[%s1028_s29] sm:$0xff]  ;;  %v894_v10 = vld [vmem:[%s1028_s29 + $0x8] sm:$0xff]  ;;  %v895_v14 = vld [vmem:[%s1028_s29 + $0x10] sm:$0xff] }
  0x10   : > { %v897_v7 = vld [vmem:[%s1028_s29 + $0x20] sm:$0xff]  ;;  %v898_v11 = vld [vmem:[%s1028_s29 + $0x28] sm:$0xff]  ;;  %v899_v15 = vld [vmem:[%s1028_s29 + $0x30] sm:$0xff] }
  0x11   : > { %v450_v3 = vsel %vm448_vm0, %v396_v2, 0  ;;  %v901_v8 = vld [vmem:[%s1028_s29 + $0x40] sm:$0xff]  ;;  %v902_v12 = vld [vmem:[%s1028_s29 + $0x48] sm:$0xff]  ;;  %v903_v16 = vld [vmem:[%s1028_s29 + $0x50] sm:$0xff] }
  0x12   : > { %457 = vmatpush.bf16.msra.mxu0 %v450_v3  ;;  %911 = vmatpush.bf16.msra.mxu1 %v450_v3  ;;  %v905_v9 = vld [vmem:[%s1028_s29 + $0x60] sm:$0xff]  ;;  %v906_v13 = vld [vmem:[%s1028_s29 + $0x68] sm:$0xff]  ;;  %v907_v17 = vld [vmem:[%s1028_s29 + $0x70] sm:$0xff] }
  0x13   : > { %912 = vmatpush.bf16.msra.mxu2 %v450_v3  ;;  %913 = vmatpush.bf16.msra.mxu3 %v450_v3  ;;  %v896_v18 = vld [vmem:[%s1028_s29 + $0x18] sm:$0xff] }
  0x14   : > { %v900_v19 = vld [vmem:[%s1028_s29 + $0x38] sm:$0xff] }
  0x15   : > { %v904_v20 = vld [vmem:[%s1028_s29 + $0x58] sm:$0xff] }
  0x16   : > { %458 = vmatpush.bf16.msra.mxu0 %v910_v4  ;;  %914 = vmatpush.bf16.msra.mxu1 %v910_v4  ;;  %v908_v21 = vld [vmem:[%s1028_s29 + $0x78] sm:$0xff] }
  0x17   : > { %915 = vmatpush.bf16.msra.mxu2 %v910_v4  ;;  %916 = vmatpush.bf16.msra.mxu3 %v910_v4 }
  0x1a   : > { %459 = vmatpush.bf16.msra.mxu0 %v909_v5  ;;  %917 = vmatpush.bf16.msra.mxu1 %v909_v5 }
  0x1b   : > { %918 = vmatpush.bf16.msra.mxu2 %v909_v5  ;;  %919 = vmatpush.bf16.msra.mxu3 %v909_v5 }
  0x1d   : > { %875 = vmatmul.msk.bf16.vlgmr.msra.gmra.mxu0 %vm399_vm1, %v893_v6  ;;  %879 = vmatmul.msk.bf16.vlgmr.msra.gmra.mxu1 %vm399_vm1, %v897_v7 }
  0x1e   : > { %883 = vmatmul.msk.bf16.vlgmr.msra.gmra.mxu2 %vm399_vm1, %v901_v8  ;;  %887 = vmatmul.msk.bf16.vlgmr.msra.gmra.mxu3 %vm399_vm1, %v905_v9 }
  0x2d   : > { %876 = vmatmul.msk.bf16.gmra.mxu0 %vm399_vm1, %v894_v10  ;;  %880 = vmatmul.msk.bf16.gmra.mxu1 %vm399_vm1, %v898_v11 }
  0x2e   : > { %884 = vmatmul.msk.bf16.gmra.mxu2 %vm399_vm1, %v902_v12  ;;  %888 = vmatmul.msk.bf16.gmra.mxu3 %vm399_vm1, %v906_v13 }
  0x3d   : > { %877 = vmatmul.msk.bf16.gmra.mxu0 %vm399_vm1, %v895_v14  ;;  %881 = vmatmul.msk.bf16.gmra.mxu1 %vm399_vm1, %v899_v15 }
  0x3e   : > { %885 = vmatmul.msk.bf16.gmra.mxu2 %vm399_vm1, %v903_v16  ;;  %889 = vmatmul.msk.bf16.gmra.mxu3 %vm399_vm1, %v907_v17 }
  0x4d   : > { %878 = vmatmul.msk.bf16.gmra.mxu0 %vm399_vm1, %v896_v18  ;;  %882 = vmatmul.msk.bf16.gmra.mxu1 %vm399_vm1, %v900_v19 }
  0x4e   : > { %886 = vmatmul.msk.bf16.gmra.mxu2 %vm399_vm1, %v904_v20  ;;  %890 = vmatmul.msk.bf16.gmra.mxu3 %vm399_vm1, %v908_v21 }
  0x9a   : > { %v461_v24 = vpop.f32.mrf.mxu0  ;;  %v481_v25 = vpop.f32.mrf.mxu1 }
  0x9b   : > { %v545_v26 = vmul.f32 %v1065_v22, %v461_v24  ;;  %v553_v27 = vmul.f32 %v1065_v22, %v481_v25 }
  0x9d   : > { %v581_v28 = vadd.f32 %v1070_v23, %v545_v26  ;;  %v589_v29 = vadd.f32 %v1070_v23, %v553_v27 }
  0x9f   : > { %v613_v30 = vmax.f32 %v581_v28, 0.0  ;;  %v621_v31 = vmax.f32 %v589_v29, 0.0 }
  0xa1   : > { %645 = vst [vmem:[%s1080_s11] sm:$0xff] %v613_v30  ;;  %v501_v32 = vpop.f32.mrf.mxu2  ;;  %v521_v33 = vpop.f32.mrf.mxu3 }
  0xa2   : > { %653 = vst [vmem:[%s1080_s11 + $0x40] sm:$0xff] %v621_v31  ;;  %v561_v34 = vmul.f32 %v1065_v22, %v501_v32  ;;  %v569_v35 = vmul.f32 %v1065_v22, %v521_v33  ;;  %v463_v36 = vpop.f32.mrf.mxu0  ;;  %v483_v37 = vpop.f32.mrf.mxu1 }
  0xa3   : > { %v546_v38 = vmul.f32 %v1065_v22, %v463_v36  ;;  %v554_v39 = vmul.f32 %v1065_v22, %v483_v37 }
  0xa4   : > { %v597_v40 = vadd.f32 %v1070_v23, %v561_v34  ;;  %v605_v41 = vadd.f32 %v1070_v23, %v569_v35 }
  0xa5   : > { %v582_v42 = vadd.f32 %v1070_v23, %v546_v38  ;;  %v590_v43 = vadd.f32 %v1070_v23, %v554_v39 }
  0xa6   : > { %v629_v44 = vmax.f32 %v597_v40, 0.0  ;;  %v637_v45 = vmax.f32 %v605_v41, 0.0 }
  0xa7   : > { %v614_v46 = vmax.f32 %v582_v42, 0.0  ;;  %v622_v47 = vmax.f32 %v590_v43, 0.0 }
  0xa8   : > { %661 = vst [vmem:[%s1080_s11 + $0x80] sm:$0xff] %v629_v44 }
  0xa9   : > { %669 = vst [vmem:[%s1080_s11 + $0xc0] sm:$0xff] %v637_v45  ;;  %v503_v48 = vpop.f32.mrf.mxu2  ;;  %v523_v49 = vpop.f32.mrf.mxu3 }
  0xaa   : > { %646 = vst [vmem:[%s1080_s11 + $0x8] sm:$0xff] %v614_v46  ;;  %v562_v50 = vmul.f32 %v1065_v22, %v503_v48  ;;  %v570_v51 = vmul.f32 %v1065_v22, %v523_v49  ;;  %v466_v52 = vpop.f32.mrf.mxu0  ;;  %v486_v53 = vpop.f32.mrf.mxu1 }
  0xab   : > { %654 = vst [vmem:[%s1080_s11 + $0x48] sm:$0xff] %v622_v47  ;;  %v547_v54 = vmul.f32 %v1065_v22, %v466_v52  ;;  %v555_v55 = vmul.f32 %v1065_v22, %v486_v53 }
  0xac   : > { %v598_v56 = vadd.f32 %v1070_v23, %v562_v50  ;;  %v606_v57 = vadd.f32 %v1070_v23, %v570_v51 }
  0xad   : > { %v583_v58 = vadd.f32 %v1070_v23, %v547_v54  ;;  %v591_v59 = vadd.f32 %v1070_v23, %v555_v55 }
  0xae   : > { %v630_v60 = vmax.f32 %v598_v56, 0.0  ;;  %v638_v61 = vmax.f32 %v606_v57, 0.0 }
  0xaf   : > { %v615_v62 = vmax.f32 %v583_v58, 0.0  ;;  %v623_v63 = vmax.f32 %v591_v59, 0.0 }
  0xb0   : > { %662 = vst [vmem:[%s1080_s11 + $0x88] sm:$0xff] %v630_v60 }
  0xb1   : > { %670 = vst [vmem:[%s1080_s11 + $0xc8] sm:$0xff] %v638_v61  ;;  %v506_v0 = vpop.f32.mrf.mxu2  ;;  %v526_v1 = vpop.f32.mrf.mxu3 }
  0xb2   : > { %647 = vst [vmem:[%s1080_s11 + $0x10] sm:$0xff] %v615_v62  ;;  %v563_v2 = vmul.f32 %v1065_v22, %v506_v0  ;;  %v571_v3 = vmul.f32 %v1065_v22, %v526_v1  ;;  %v468_v4 = vpop.f32.mrf.mxu0  ;;  %v488_v5 = vpop.f32.mrf.mxu1 }
  0xb3   : > { %655 = vst [vmem:[%s1080_s11 + $0x50] sm:$0xff] %v623_v63  ;;  %v548_v6 = vmul.f32 %v1065_v22, %v468_v4  ;;  %v556_v7 = vmul.f32 %v1065_v22, %v488_v5 }
  0xb4   : > { %v599_v8 = vadd.f32 %v1070_v23, %v563_v2  ;;  %v607_v9 = vadd.f32 %v1070_v23, %v571_v3 }
  0xb5   : > { %v584_v10 = vadd.f32 %v1070_v23, %v548_v6  ;;  %v592_v11 = vadd.f32 %v1070_v23, %v556_v7 }
  0xb6   : > { %v631_v12 = vmax.f32 %v599_v8, 0.0  ;;  %v639_v13 = vmax.f32 %v607_v9, 0.0 }
  0xb7   : > { %v616_v14 = vmax.f32 %v584_v10, 0.0  ;;  %v624_v15 = vmax.f32 %v592_v11, 0.0 }
  0xb8   : > { %663 = vst [vmem:[%s1080_s11 + $0x90] sm:$0xff] %v631_v12 }
  0xb9   : > { %671 = vst [vmem:[%s1080_s11 + $0xd0] sm:$0xff] %v639_v13  ;;  %v508_v16 = vpop.f32.mrf.mxu2  ;;  %v528_v17 = vpop.f32.mrf.mxu3 }
  0xba   : > { %648 = vst [vmem:[%s1080_s11 + $0x18] sm:$0xff] %v616_v14  ;;  %v564_v18 = vmul.f32 %v1065_v22, %v508_v16  ;;  %v572_v19 = vmul.f32 %v1065_v22, %v528_v17  ;;  %v471_v20 = vpop.f32.mrf.mxu0  ;;  %v491_v21 = vpop.f32.mrf.mxu1 }
  0xbb   : > { %656 = vst [vmem:[%s1080_s11 + $0x58] sm:$0xff] %v624_v15  ;;  %v549_v24 = vmul.f32 %v1065_v22, %v471_v20  ;;  %v557_v25 = vmul.f32 %v1065_v22, %v491_v21 }
  0xbc   : > { %v600_v26 = vadd.f32 %v1070_v23, %v564_v18  ;;  %v608_v27 = vadd.f32 %v1070_v23, %v572_v19 }
  0xbd   : > { %v585_v28 = vadd.f32 %v1070_v23, %v549_v24  ;;  %v593_v29 = vadd.f32 %v1070_v23, %v557_v25 }
  0xbe   : > { %v632_v30 = vmax.f32 %v600_v26, 0.0  ;;  %v640_v31 = vmax.f32 %v608_v27, 0.0 }
  0xbf   : > { %v617_v32 = vmax.f32 %v585_v28, 0.0  ;;  %v625_v33 = vmax.f32 %v593_v29, 0.0 }
  0xc0   : > { %664 = vst [vmem:[%s1080_s11 + $0x98] sm:$0xff] %v632_v30 }
  0xc1   : > { %672 = vst [vmem:[%s1080_s11 + $0xd8] sm:$0xff] %v640_v31  ;;  %v511_v34 = vpop.f32.mrf.mxu2  ;;  %v531_v35 = vpop.f32.mrf.mxu3 }
  0xc2   : > { %649 = vst [vmem:[%s1080_s11 + $0x20] sm:$0xff] %v617_v32  ;;  %v565_v36 = vmul.f32 %v1065_v22, %v511_v34  ;;  %v573_v37 = vmul.f32 %v1065_v22, %v531_v35  ;;  %v473_v38 = vpop.f32.mrf.mxu0  ;;  %v493_v39 = vpop.f32.mrf.mxu1 }
  0xc3   : > { %657 = vst [vmem:[%s1080_s11 + $0x60] sm:$0xff] %v625_v33  ;;  %v550_v40 = vmul.f32 %v1065_v22, %v473_v38  ;;  %v558_v41 = vmul.f32 %v1065_v22, %v493_v39 }
  0xc4   : > { %v601_v42 = vadd.f32 %v1070_v23, %v565_v36  ;;  %v609_v43 = vadd.f32 %v1070_v23, %v573_v37 }
  0xc5   : > { %v586_v44 = vadd.f32 %v1070_v23, %v550_v40  ;;  %v594_v45 = vadd.f32 %v1070_v23, %v558_v41 }
  0xc6   : > { %v633_v46 = vmax.f32 %v601_v42, 0.0  ;;  %v641_v47 = vmax.f32 %v609_v43, 0.0 }
  0xc7   : > { %v618_v48 = vmax.f32 %v586_v44, 0.0  ;;  %v626_v49 = vmax.f32 %v594_v45, 0.0 }
  0xc8   : > { %665 = vst [vmem:[%s1080_s11 + $0xa0] sm:$0xff] %v633_v46 }
  0xc9   : > { %673 = vst [vmem:[%s1080_s11 + $0xe0] sm:$0xff] %v641_v47  ;;  %v513_v50 = vpop.f32.mrf.mxu2  ;;  %v533_v51 = vpop.f32.mrf.mxu3 }
  0xca   : > { %650 = vst [vmem:[%s1080_s11 + $0x28] sm:$0xff] %v618_v48  ;;  %v566_v52 = vmul.f32 %v1065_v22, %v513_v50  ;;  %v574_v53 = vmul.f32 %v1065_v22, %v533_v51  ;;  %v476_v54 = vpop.f32.mrf.mxu0  ;;  %v496_v55 = vpop.f32.mrf.mxu1 }
  0xcb   : > { %658 = vst [vmem:[%s1080_s11 + $0x68] sm:$0xff] %v626_v49  ;;  %v551_v56 = vmul.f32 %v1065_v22, %v476_v54  ;;  %v559_v57 = vmul.f32 %v1065_v22, %v496_v55 }
  0xcc   : > { %v602_v58 = vadd.f32 %v1070_v23, %v566_v52  ;;  %v610_v59 = vadd.f32 %v1070_v23, %v574_v53 }
  0xcd   : > { %v587_v60 = vadd.f32 %v1070_v23, %v551_v56  ;;  %v595_v61 = vadd.f32 %v1070_v23, %v559_v57 }
  0xce   : > { %v634_v62 = vmax.f32 %v602_v58, 0.0  ;;  %v642_v63 = vmax.f32 %v610_v59, 0.0 }
  0xcf   : > { %v619_v0 = vmax.f32 %v587_v60, 0.0  ;;  %v627_v1 = vmax.f32 %v595_v61, 0.0 }
  0xd0   : > { %666 = vst [vmem:[%s1080_s11 + $0xa8] sm:$0xff] %v634_v62 }
  0xd1   : > { %674 = vst [vmem:[%s1080_s11 + $0xe8] sm:$0xff] %v642_v63  ;;  %v516_v2 = vpop.f32.mrf.mxu2  ;;  %v536_v3 = vpop.f32.mrf.mxu3 }
  0xd2   : > { %651 = vst [vmem:[%s1080_s11 + $0x30] sm:$0xff] %v619_v0  ;;  %v567_v4 = vmul.f32 %v1065_v22, %v516_v2  ;;  %v575_v5 = vmul.f32 %v1065_v22, %v536_v3  ;;  %v478_v6 = vpop.f32.mrf.mxu0  ;;  %v498_v7 = vpop.f32.mrf.mxu1 }
  0xd3   : > { %659 = vst [vmem:[%s1080_s11 + $0x70] sm:$0xff] %v627_v1  ;;  %v552_v8 = vmul.f32 %v1065_v22, %v478_v6  ;;  %v560_v9 = vmul.f32 %v1065_v22, %v498_v7 }
  0xd4   : > { %v603_v10 = vadd.f32 %v1070_v23, %v567_v4  ;;  %v611_v11 = vadd.f32 %v1070_v23, %v575_v5 }
  0xd5   : > { %v588_v12 = vadd.f32 %v1070_v23, %v552_v8  ;;  %v596_v13 = vadd.f32 %v1070_v23, %v560_v9 }
  0xd6   : > { %v635_v14 = vmax.f32 %v603_v10, 0.0  ;;  %v643_v15 = vmax.f32 %v611_v11, 0.0 }
  0xd7   : > { %v620_v16 = vmax.f32 %v588_v12, 0.0  ;;  %v628_v17 = vmax.f32 %v596_v13, 0.0 }
  0xd8   : > { %667 = vst [vmem:[%s1080_s11 + $0xb0] sm:$0xff] %v635_v14 }
  0xd9   : > { %675 = vst [vmem:[%s1080_s11 + $0xf0] sm:$0xff] %v643_v15  ;;  %v518_v18 = vpop.f32.mrf.mxu2  ;;  %v538_v19 = vpop.f32.mrf.mxu3 }
  0xda   : > { %652 = vst [vmem:[%s1080_s11 + $0x38] sm:$0xff] %v620_v16  ;;  %v568_v20 = vmul.f32 %v1065_v22, %v518_v18  ;;  %v576_v21 = vmul.f32 %v1065_v22, %v538_v19 }
  0xdb   : > { %660 = vst [vmem:[%s1080_s11 + $0x78] sm:$0xff] %v628_v17 }
  0xdc   : > { %v604_v24 = vadd.f32 %v1070_v23, %v568_v20  ;;  %v612_v25 = vadd.f32 %v1070_v23, %v576_v21 }
  0xde   : > { %v636_v26 = vmax.f32 %v604_v24, 0.0  ;;  %v644_v27 = vmax.f32 %v612_v25, 0.0 }
  0xe0   : > { %668 = vst [vmem:[%s1080_s11 + $0xb8] sm:$0xff] %v636_v26 }
  0xe1   : > { %676 = vst [vmem:[%s1080_s11 + $0xf8] sm:$0xff] %v644_v27 }
  0xe2 PF: > { %s14_s17 = sadd.s32 1, %s968_s17   ;;  %s1188_s15 = smov %s964_s16 }
  0xe3   : > { %p11_p5 = scmp.ge.s32.totalorder %s14_s17, 4   ;;  %s1189_s16 = smov %s1191_s18 }
  0xe5   :  { %13 = sbr.rel (!%p11_p5) target bundleno = 2 (0x2), region = 75 }

</bundles_post_ra>
